<compile_context>
chip_gen: v5e
topology: v5e:2x2
jax: 0.10.0
libtpu: 0.0.40
codegen_flags: <defaults>
</compile_context>

<pallas_src>
import jax
import jax.numpy as jnp
from jax.experimental import pallas as pl
from jax.experimental.pallas import tpu as pltpu


def _stats_kernel(col_ref, w_ref, stats_ref):
    """Pass 1: per-tile per-channel BN partial statistics (sum, sum-of-squares).

    col_ref:   (tile_m, 9*Cin)  bf16   im2col activations
    w_ref:     (9*Cin, Cpad)    bf16   conv weights (Cout zero-padded to Cpad)
    stats_ref: (1, 2, Cpad)     f32    row 0 = sum, row 1 = sum of squares
    """
    acc = jnp.dot(col_ref[...], w_ref[...], preferred_element_type=jnp.float32)
    stats_ref[0, 0:1, :] = jnp.sum(acc, axis=0, keepdims=True)
    stats_ref[0, 1:2, :] = jnp.sum(acc * acc, axis=0, keepdims=True)


def _conv_bn_kernel(col_ref, w_ref, scale_ref, shift_ref, out_ref):
    """Pass 2: recompute the conv tile and apply the folded BN affine.

    out = (col @ w) * scale + shift     (one MXU matmul + VPU affine per tile)
    """
    acc = jnp.dot(col_ref[...], w_ref[...], preferred_element_type=jnp.float32)
    out_ref[...] = acc * scale_ref[...] + shift_ref[...]


def _tile_vmem_bytes(tm, K, Cpad):
    """Conservative double-buffered VMEM footprint of one grid step."""
    return (2 * tm * K * 2          # bf16 col tile (double-buffered)
            + 2 * K * Cpad * 2      # bf16 weights (counted double-buffered)
            + 2 * tm * Cpad * 4     # f32 output tile (double-buffered)
            + 4 * 2 * Cpad * 4)     # stats / scale / shift rows


def conv33_op(x_nchw, w_hwio, bias, gamma, beta, eps=1e-5, tile_m=512):
    """Pallas implementation of Conv33Op.forward. Input/output are NCHW."""
    # Conv bias cancels exactly under the training-mode BatchNorm that follows
    # (mean subtraction removes it, variance is unchanged), so it is folded out.
    del bias
    # TODO(synk): BatchNorm running_mean/running_var buffer updates are a
    # training side effect not part of the returned forward value; not emitted.

    N, Cin, H, W = x_nchw.shape
    Cout = w_hwio.shape[-1]
    M = N * H * W
    K = 9 * Cin
    Cpad = ((Cout + 127) // 128) * 128           # lane-dense channel dim

    # --- im2col (XLA side), built directly in bf16 (no f32 staging copy). ---
    x_nhwc = jnp.transpose(x_nchw, (0, 2, 3, 1)).astype(jnp.bfloat16)
    xpad = jnp.pad(x_nhwc, ((0, 0), (1, 1), (1, 1), (0, 0)))        # pad=1
    taps = [xpad[:, kh:kh + H, kw:kw + W, :]
            for kh in range(3) for kw in range(3)]
    col = jnp.stack(taps, axis=3).reshape(M, K)                     # (M, 9*Cin) bf16

    # --- tile_m selection: multiple of 8, >=2 tiles if possible (v7x 2 TCs),
    # --- and a VMEM-footprint cap that is safe on v7x's smaller VMEM. ---
    tile_m = max(8, (int(tile_m) // 8) * 8)
    half_m = max(8, (((M + 1) // 2) + 7) // 8 * 8)
    tile_m_eff = min(tile_m, half_m)

    try:
        phys_vmem = int(pltpu.get_tpu_info().vmem_capacity_bytes)
    except Exception:
        phys_vmem = 64 * 1024 * 1024             # v7x worst case per TensorCore
    budget = phys_vmem // 2                      # headroom for compiler scratch
    while tile_m_eff > 8 and _tile_vmem_bytes(tile_m_eff, K, Cpad) > budget:
        tile_m_eff = max(8, (tile_m_eff // 16) * 8)

    num_tiles = int(pl.cdiv(M, tile_m_eff))
    Mp = num_tiles * tile_m_eff
    if Mp != M:
        # Padded rows are all-zero and (with bias folded out) contribute
        # exactly 0 to both BN partial sums.
        col = jnp.pad(col, ((0, Mp - M), (0, 0)))

    w_mat = w_hwio.reshape(K, Cout).astype(jnp.bfloat16)            # (kh,kw,Cin)->K
    if Cpad != Cout:
        w_mat = jnp.pad(w_mat, ((0, 0), (0, Cpad - Cout)))

    vmem_limit = int(min(max(phys_vmem * 3 // 4, 32 * 1024 * 1024),
                         max(32 * 1024 * 1024,
                             2 * _tile_vmem_bytes(tile_m_eff, K, Cpad))))
    vmem_limit = min(vmem_limit, phys_vmem * 3 // 4)
    cparams = pltpu.CompilerParams(
        dimension_semantics=("parallel",),       # shards tiles across v7x's 2 TCs
        vmem_limit_bytes=vmem_limit)

    matmul_flops = 2 * Mp * K * Cpad

    # --- Pass 1: per-tile BN partial statistics (reads col, writes tiny stats). ---
    part_stats = pl.pallas_call(
        _stats_kernel,
        out_shape=jax.ShapeDtypeStruct((num_tiles, 2, Cpad), jnp.float32),
        grid=(num_tiles,),
        in_specs=[pl.BlockSpec((tile_m_eff, K), lambda i: (i, 0)),
                  pl.BlockSpec((K, Cpad), lambda i: (0, 0))],
        out_specs=pl.BlockSpec((1, 2, Cpad), lambda i: (i, 0, 0)),
        compiler_params=cparams,
        cost_estimate=pl.CostEstimate(
            flops=matmul_flops,
            transcendentals=0,
            bytes_accessed=col.size * 2 + w_mat.size * 2
            + num_tiles * 2 * Cpad * 4),
    )(col, w_mat)

    # --- Tiny cross-tile reduction + BN scale/shift folding (plain JAX). ---
    total = jnp.sum(part_stats, axis=0)                             # (2, Cpad)
    mean = total[0] / M                                             # real M, not Mp
    var = jnp.maximum(total[1] / M - mean * mean, 0.0)              # biased, clamped
    gamma_p = jnp.pad(gamma.astype(jnp.float32), (0, Cpad - Cout))
    beta_p = jnp.pad(beta.astype(jnp.float32), (0, Cpad - Cout))
    scale = gamma_p * jax.lax.rsqrt(var + eps)                      # 0 on padded channels
    shift = beta_p - mean * scale

    # --- Pass 2: recompute conv tile and apply y = conv * scale + shift. ---
    y = pl.pallas_call(
        _conv_bn_kernel,
        out_shape=jax.ShapeDtypeStruct((Mp, Cpad), jnp.float32),
        grid=(num_tiles,),
        in_specs=[pl.BlockSpec((tile_m_eff, K), lambda i: (i, 0)),
                  pl.BlockSpec((K, Cpad), lambda i: (0, 0)),
                  pl.BlockSpec((1, Cpad), lambda i: (0, 0)),
                  pl.BlockSpec((1, Cpad), lambda i: (0, 0))],
        out_specs=pl.BlockSpec((tile_m_eff, Cpad), lambda i: (i, 0)),
        compiler_params=cparams,
        cost_estimate=pl.CostEstimate(
            flops=matmul_flops + 2 * Mp * Cpad,
            transcendentals=0,
            bytes_accessed=col.size * 2 + w_mat.size * 2
            + 2 * Cpad * 4 + Mp * Cpad * 4),
    )(col, w_mat, scale.reshape(1, Cpad), shift.reshape(1, Cpad))

    y = y[:M, :Cout].reshape(N, H, W, Cout)
    return jnp.transpose(y, (0, 3, 1, 2))                           # back to NCHW


def _reference(x_nchw, w_hwio, bias, gamma, beta, eps=1e-5):
    """Pure-JAX reference (lax.conv + training-mode BN) for a sanity check."""
    x_nhwc = jnp.transpose(x_nchw, (0, 2, 3, 1)).astype(jnp.float32)
    y = jax.lax.conv_general_dilated(
        x_nhwc, w_hwio, window_strides=(1, 1), padding=((1, 1), (1, 1)),
        dimension_numbers=("NHWC", "HWIO", "NHWC"),
        precision=jax.lax.Precision.HIGHEST)
    y = y + bias.reshape(1, 1, 1, -1)
    mean = jnp.mean(y, axis=(0, 1, 2), keepdims=True)
    var = jnp.mean((y - mean) ** 2, axis=(0, 1, 2), keepdims=True)
    y = (y - mean) * jax.lax.rsqrt(var + eps)
    y = y * gamma.reshape(1, 1, 1, -1) + beta.reshape(1, 1, 1, -1)
    return jnp.transpose(y, (0, 3, 1, 2))


if __name__ == "__main__":
    # Small shapes consistent with the module: NCHW input, 3x3 conv, pad 1.
    N, Cin, Cout, H, W = 2, 4, 8, 16, 16

    key = jax.random.PRNGKey(0)
    kx, kw, kb = jax.random.split(key, 3)

    x = jax.random.normal(kx, (N, Cin, H, W), dtype=jnp.float32)
    w_hwio = 0.1 * jax.random.normal(kw, (3, 3, Cin, Cout), dtype=jnp.float32)
    bias = 0.1 * jax.random.normal(kb, (Cout,), dtype=jnp.float32)
    gamma = jnp.ones((Cout,), dtype=jnp.float32)    # BatchNorm2d default weight
    beta = jnp.zeros((Cout,), dtype=jnp.float32)    # BatchNorm2d default bias

    out = jax.block_until_ready(conv33_op(x, w_hwio, bias, gamma, beta))
    ref = jax.block_until_ready(_reference(x, w_hwio, bias, gamma, beta))

    assert out.shape == (N, Cout, H, W), out.shape
    # bf16 MXU operands -> slightly relaxed tolerance vs the f32 reference;
    # accumulation and BN statistics remain f32.
    assert jnp.allclose(out, ref, atol=2e-2, rtol=2e-2), "mismatch vs JAX reference"

    print("KERNEL_OK")
</pallas_src>

<mosaic_0001>
module attributes {stable_mosaic.version = 11 : i64} {
  func.func @_stats_kernel(%arg0: i32, %arg1: memref<256x36xbf16, #tpu.memory_space<vmem>>, %arg2: memref<36x128xbf16, #tpu.memory_space<vmem>>, %arg3: memref<1x2x128xf32, #tpu.memory_space<vmem>>) attributes {dimension_semantics = [#tpu.dimension_semantics<parallel>], iteration_bounds = array<i64: 2>, scalar_prefetch = 0 : i64, scratch_operands = 0 : i64, tpu.core_type = #tpu.core_type<tc>, window_params = [{transform_indices = @transform_0, window_bounds = array<i64: 256, 36>}, {pipeline_mode = #tpu.pipeline_mode<synchronous>, transform_indices = @transform_1, window_bounds = array<i64: 36, 128>}, {transform_indices = @transform_2, window_bounds = array<i64: 1, 2, 128>}]} {
    %c0 = arith.constant 0 : index
    %c0_0 = arith.constant 0 : index
    %0 = vector.load %arg1[%c0, %c0_0] : memref<256x36xbf16, #tpu.memory_space<vmem>>, vector<256x36xbf16>
    %c0_1 = arith.constant 0 : index
    %c0_2 = arith.constant 0 : index
    %1 = vector.load %arg2[%c0_1, %c0_2] : memref<36x128xbf16, #tpu.memory_space<vmem>>, vector<36x128xbf16>
    %cst = arith.constant dense<0.000000e+00> : vector<256x128xf32>
    %2 = tpu.matmul %0, %1, %cst {dimension_numbers = #tpu.dot_dimension_numbers<[1], [0], [0], [1], [0, 0, 1, 1], [], []>} : vector<256x36xbf16>, vector<36x128xbf16>, vector<256x128xf32> -> vector<256x128xf32>
    %cst_3 = arith.constant dense<0.000000e+00> : vector<128xf32>
    %3 = vector.multi_reduction <add>, %2, %cst_3 [0] : vector<256x128xf32> to vector<128xf32>
    %4 = vector.shape_cast %3 : vector<128xf32> to vector<1x128xf32>
    %c0_4 = arith.constant 0 : index
    %c0_5 = arith.constant 0 : index
    %c0_6 = arith.constant 0 : index
    %5 = vector.load %arg3[%c0_4, %c0_5, %c0_6] : memref<1x2x128xf32, #tpu.memory_space<vmem>>, vector<1x1x128xf32>
    %6 = vector.shape_cast %5 : vector<1x1x128xf32> to vector<1x128xf32>
    %7 = vector.shape_cast %4 : vector<1x128xf32> to vector<1x1x128xf32>
    tpu.vector_store %arg3[%c0_4, %c0_5, %c0_6], %7 {strides = array<i32>} : memref<1x2x128xf32, #tpu.memory_space<vmem>>, vector<1x1x128xf32>,
    %8 = arith.mulf %2, %2 : vector<256x128xf32>
    %cst_7 = arith.constant dense<0.000000e+00> : vector<128xf32>
    %9 = vector.multi_reduction <add>, %8, %cst_7 [0] : vector<256x128xf32> to vector<128xf32>
    %10 = vector.shape_cast %9 : vector<128xf32> to vector<1x128xf32>
    %c0_8 = arith.constant 0 : index
    %c1 = arith.constant 1 : index
    %c0_9 = arith.constant 0 : index
    %11 = vector.load %arg3[%c0_8, %c1, %c0_9] : memref<1x2x128xf32, #tpu.memory_space<vmem>>, vector<1x1x128xf32>
    %12 = vector.shape_cast %11 : vector<1x1x128xf32> to vector<1x128xf32>
    %13 = vector.shape_cast %10 : vector<1x128xf32> to vector<1x1x128xf32>
    tpu.vector_store %arg3[%c0_8, %c1, %c0_9], %13 {strides = array<i32>} : memref<1x2x128xf32, #tpu.memory_space<vmem>>, vector<1x1x128xf32>,
    return
  }
  func.func @transform_0(%arg0: i32) -> (i32, i32) {
    %c0_i32 = arith.constant 0 : i32
    %c0_i32_0 = arith.constant 0 : i32
    return %arg0, %c0_i32 : i32, i32
  }
  func.func @transform_1(%arg0: i32) -> (i32, i32) {
    %c0_i32 = arith.constant 0 : i32
    %c0_i32_0 = arith.constant 0 : i32
    %c0_i32_1 = arith.constant 0 : i32
    return %c0_i32, %c0_i32_0 : i32, i32
  }
  func.func @transform_2(%arg0: i32) -> (i32, i32, i32) {
    %c0_i32 = arith.constant 0 : i32
    %c0_i32_0 = arith.constant 0 : i32
    %c0_i32_1 = arith.constant 0 : i32
    return %arg0, %c0_i32, %c0_i32_0 : i32, i32, i32
  }
}

</mosaic_0001>

<bundles_post_ra>
// kernel: tpu_custom_call.1
= control target key start
LH: loop header
LB: loop body
LE: loop exit
PB: predicated region body
PF: predicated region fallthrough
CT: control target
= control target key end

     0   :  { %7 = vsyncpa [#allocation3], 0  ;;  %s1008_s0 = inlined_call_operand.vmem [shape: bf16[512,36], index: 0, kind: input, shape index: {}]   ;;  %s1009_s1 = inlined_call_operand.vmem [shape: bf16[36,128], index: 1, kind: input, shape index: {}]   ;;  %s1010_s2 = inlined_call_operand.hbm [shape: f32[2,2,128], index: 2, kind: output, shape index: {}]  }
   0x1   :  { %9 = vsyncpa [#allocation3 + $0x1], 0  ;;  %s846_s9 = smov 0   ;;  %s848_s10 = smov 0  }
   0x2   :  { %s850_s11 = smov 0   ;;  %s852_s12 = smov 0  }
   0x3 LB: > { %s867_s13 = sadd.s32 4294967295, %s829_s12   ;;  %s602_s14 = sadd.s32 4294967294, %s829_s12   ;;  %s829_s12 = sphi %s852_s12, %s1016_s12   ;;  %s825_s11 = sphi %s850_s11, %s1015_s11   ;;  %s821_s10 = sphi %s848_s10, %s1014_s10   ;;  %s817_s9 = sphi %s846_s9, %s1013_s9  }
   0x4   : > { %s871_s15 = sadd.s32 1, %s829_s12   ;;  %s69_s16 = sadd.s32 1, %s825_s11 }
   0x5   : > { %s66_s17 = ssub.s32 %s829_s12, %s871_s15  ;;  %p79_p0 = scmp.ne.s32.totalorder %s825_s11, %s821_s10 }
   0x6   : > { %p67_p1 = scmp.eq.s32.totalorder %s66_s17, 0  ;;  %p80_p2 = scmp.eq.s32.totalorder %s867_s13, 1 }
   0x7   : > { %p85_p3 = scmp.ne.s32.totalorder %s821_s10, %s817_s9  ;;  %p86_p4 = scmp.eq.s32.totalorder %s602_s14, 1 }
   0x8   : > { %s882_s18 = scalar_select %p67_p1, %s825_s11, %s69_s16  }
   0x9   : > { %p884_p5 = por %p80_p2, %p79_p0  ;;  %p888_p6 = por %p86_p4, %p85_p3 }
   0xa   : > { %p605_p7 = scmp.ge.s32.totalorder %s829_s12, 1  ;;  %p116_p8 = scmp.lt.s32.totalorder %s829_s12, 3 }
   0xc   : > { %p117_p9 = pnand %p605_p7, %p116_p8 }
   0xd   : > { %s607_s23 = sshll.u32 (!%p117_p9), %s867_s13, 5  ;;  %s135_s4 = sand.u32 (!%p117_p9), 1, %s821_s10  }
   0xe   : > { %120 = sbr.rel (%p117_p9) target bundleno = 285 (0x11d), region = 28  ;;  %p139_p10 = scmp.lt.s32.totalorder (!%p117_p9), %s607_s23, 63 }
   0xf   : > { %s606_s5 = sshll.u32 (!%p117_p9), %s135_s4, 1  ;;  %s698_s6 = sshll.u32 (!%p117_p9), %s867_s13, 1 }
  0x10   : > { %s538_s14 = scalar_lea.hbm (!%p117_p9), %s1010_s2, %s698_s6  ;;  %s137_s16 = scalar_lea.vmem (!%p117_p9), [#allocation2], %s606_s5 }
  0x11   : > { %s540_s17 = sshll.u32 (!%p117_p9), %s137_s16, 4  ;;  %s542_s21 = sshll.u32 (!%p117_p9), %s538_s14, 4  ;;  %s541_s17 = int_to_ptr.vmem [resolvable:$true] %s540_s17  ;;  %s543_s21 = int_to_ptr.hbm [resolvable:$true] %s542_s21 }
  0x12   : > { %s528_s13 = scalar_lea.sflag (!%p117_p9), [#allocation3], %s135_s4  ;;  %s781_s22 = sshra.s32 (!%p117_p9), %s543_s21, 4  ;;  %s782_s22 = int_to_ptr.hbm [resolvable:$true] %s781_s22 }
  0x13   : > { %v181_v0 = vld [vmem:[%s1009_s1 + $0x10] sm:$0x3]  ;;  %vm326_vm0 = vcmask 1041408   ;;  %s1018_s23 = smov (!%p139_p10, %s607_s23), 63  ;;  %v718_v4 = vld [vmem:[%s1009_s1 + $0x8] sm:$0xff]  ;;  %v717_v5 = vld [vmem:[%s1009_s1] sm:$0xff]  ;;  %p788_p0 = scmp.lt.s32.totalorder %s782_s22, %s1010_s2 }
  0x14   : > { %v271_v1 = vunpack.c.l.b16 %v181_v0  ;;  %s608_s26 = sshll.u32 %s1018_s23, 2  ;;  %vm277_vm1 = vcmask 293888   ;;  %s783_s23 = scalar_lea.hbm %s782_s22, 2 }
  0x15   : > { %s907_s3 = scalar_lea.vmem %s1008_s0, %s608_s26  ;;  %p784_p11 = scmp.ne.s32.totalorder %s782_s22, %s783_s23 }
  0x16   : > { %v274_v2 = vpack.c.b16 %v271_v1, %v271_v1  ;;  %v701_v6 = vld [vmem:[%s907_s3] sm:$0xff]  ;;  %v702_v10 = vld [vmem:[%s907_s3 + $0x8] sm:$0xff]  ;;  %v703_v14 = vld [vmem:[%s907_s3 + $0x10] sm:$0xff]  ;;  %s787_s26 = scalar_lea.hbm %s1010_s2, 4 }
  0x17   : > { %v705_v7 = vld [vmem:[%s907_s3 + $0x20] sm:$0xff]  ;;  %v706_v11 = vld [vmem:[%s907_s3 + $0x28] sm:$0xff]  ;;  %v707_v15 = vld [vmem:[%s907_s3 + $0x30] sm:$0xff]  ;;  %p785_p12 = pnand %p784_p11, %p884_p5  ;;  %p789_p1 = scmp.lt.s32.totalorder %s787_s26, %s783_s23 }
  0x18   : > { %v328_v3 = vsel %vm326_vm0, %v274_v2, 0  ;;  %v709_v8 = vld [vmem:[%s907_s3 + $0x40] sm:$0xff]  ;;  %v710_v12 = vld [vmem:[%s907_s3 + $0x48] sm:$0xff]  ;;  %v711_v16 = vld [vmem:[%s907_s3 + $0x50] sm:$0xff] }
  0x19   : > { %335 = vmatpush.bf16.msra.mxu0 %v328_v3  ;;  %719 = vmatpush.bf16.msra.mxu1 %v328_v3  ;;  %v713_v9 = vld [vmem:[%s907_s3 + $0x60] sm:$0xff]  ;;  %v714_v13 = vld [vmem:[%s907_s3 + $0x68] sm:$0xff]  ;;  %v715_v17 = vld [vmem:[%s907_s3 + $0x70] sm:$0xff]  ;;  %p786_p13 = pneg %p785_p12  ;;  %p790_p2 = por %p789_p1, %p788_p0 }
  0x1a   : > { %720 = vmatpush.bf16.msra.mxu2 %v328_v3  ;;  %721 = vmatpush.bf16.msra.mxu3 %v328_v3  ;;  %v704_v18 = vld [vmem:[%s907_s3 + $0x18] sm:$0xff] }
  0x1b   : > { %v708_v19 = vld [vmem:[%s907_s3 + $0x38] sm:$0xff]  ;;  %p791_p3 = pnand %p790_p2, %p786_p13 }
  0x1c   : > { %v712_v20 = vld [vmem:[%s907_s3 + $0x58] sm:$0xff] }
  0x1d   : > { %336 = vmatpush.bf16.msra.mxu0 %v718_v4  ;;  %722 = vmatpush.bf16.msra.mxu1 %v718_v4  ;;  %v716_v21 = vld [vmem:[%s907_s3 + $0x78] sm:$0xff] }
  0x1e   : > { %723 = vmatpush.bf16.msra.mxu2 %v718_v4  ;;  %724 = vmatpush.bf16.msra.mxu3 %v718_v4 }
  0x21   : > { %337 = vmatpush.bf16.msra.mxu0 %v717_v5  ;;  %725 = vmatpush.bf16.msra.mxu1 %v717_v5 }
  0x22   : > { %726 = vmatpush.bf16.msra.mxu2 %v717_v5  ;;  %727 = vmatpush.bf16.msra.mxu3 %v717_v5 }
  0x24   : > { %681 = vmatmul.msk.bf16.vlgmr.msra.gmra.mxu0 %vm277_vm1, %v701_v6  ;;  %685 = vmatmul.msk.bf16.vlgmr.msra.gmra.mxu1 %vm277_vm1, %v705_v7 }
  0x25   : > { %689 = vmatmul.msk.bf16.vlgmr.msra.gmra.mxu2 %vm277_vm1, %v709_v8  ;;  %693 = vmatmul.msk.bf16.vlgmr.msra.gmra.mxu3 %vm277_vm1, %v713_v9 }
  0x34   : > { %682 = vmatmul.msk.bf16.gmra.mxu0 %vm277_vm1, %v702_v10  ;;  %686 = vmatmul.msk.bf16.gmra.mxu1 %vm277_vm1, %v706_v11 }
  0x35   : > { %690 = vmatmul.msk.bf16.gmra.mxu2 %vm277_vm1, %v710_v12  ;;  %694 = vmatmul.msk.bf16.gmra.mxu3 %vm277_vm1, %v714_v13 }
  0x44   : > { %683 = vmatmul.msk.bf16.gmra.mxu0 %vm277_vm1, %v703_v14  ;;  %687 = vmatmul.msk.bf16.gmra.mxu1 %vm277_vm1, %v707_v15 }
  0x45   : > { %691 = vmatmul.msk.bf16.gmra.mxu2 %vm277_vm1, %v711_v16  ;;  %695 = vmatmul.msk.bf16.gmra.mxu3 %vm277_vm1, %v715_v17 }
  0x54   : > { %684 = vmatmul.msk.bf16.gmra.mxu0 %vm277_vm1, %v704_v18  ;;  %688 = vmatmul.msk.bf16.gmra.mxu1 %vm277_vm1, %v708_v19 }
  0x55   : > { %692 = vmatmul.msk.bf16.gmra.mxu2 %vm277_vm1, %v712_v20  ;;  %696 = vmatmul.msk.bf16.gmra.mxu3 %vm277_vm1, %v716_v21 }
  0xa1   : > { %v339_v22 = vpop.f32.mrf.mxu0  ;;  %v359_v23 = vpop.f32.mrf.mxu1 }
  0xa2   : > { %v457_v39 = vmul.f32 %v339_v22, %v339_v22  ;;  %v465_v1 = vmul.f32 %v359_v23, %v359_v23 }
  0xa8   : > { %v941_v27 = vpop.f32.mrf.mxu2  ;;  %v945_v33 = vpop.f32.mrf.mxu3 }
  0xa9   : > { %v341_v24 = vpop.f32.mrf.mxu0  ;;  %v361_v25 = vpop.f32.mrf.mxu1 }
  0xaa   : > { %v458_v38 = vmul.f32 %v341_v24, %v341_v24  ;;  %v419_v40 = vadd.f32 %v341_v24, %v339_v22  ;;  %v466_v5 = vmul.f32 %v361_v25, %v361_v25 }
  0xac   : > { %v489_v43 = vadd.f32 %v458_v38, %v457_v39 }
  0xb0   : > { %v943_v30 = vpop.f32.mrf.mxu2  ;;  %v949_v37 = vpop.f32.mrf.mxu3 }
  0xb1   : > { %v344_v26 = vpop.f32.mrf.mxu0  ;;  %v364_v28 = vpop.f32.mrf.mxu1 }
  0xb2   : > { %v459_v41 = vmul.f32 %v344_v26, %v344_v26  ;;  %v420_v44 = vadd.f32 %v419_v40, %v344_v26  ;;  %v467_v9 = vmul.f32 %v364_v28, %v364_v28 }
  0xb4   : > { %v490_v47 = vadd.f32 %v489_v43, %v459_v41 }
  0xb8   : > { %v947_v34 = vpop.f32.mrf.mxu2  ;;  %v953_v54 = vpop.f32.mrf.mxu3 }
  0xb9   : > { %v346_v29 = vpop.f32.mrf.mxu0  ;;  %v366_v31 = vpop.f32.mrf.mxu1  ;;  %v475_v43 = vmul.f32 %v947_v34, %v947_v34 }
  0xba   : > { %v460_v45 = vmul.f32 %v346_v29, %v346_v29  ;;  %v421_v48 = vadd.f32 %v420_v44, %v346_v29  ;;  %v468_v12 = vmul.f32 %v366_v31, %v366_v31 }
  0xbc   : > { %v491_v51 = vadd.f32 %v490_v47, %v460_v45 }
  0xc0   : > { %v951_v42 = vpop.f32.mrf.mxu2  ;;  %v406_v8 = vpop.f32.mrf.mxu3 }
  0xc1   : > { %v349_v32 = vpop.f32.mrf.mxu0  ;;  %v369_v36 = vpop.f32.mrf.mxu1 }
  0xc2   : > { %v461_v49 = vmul.f32 %v349_v32, %v349_v32  ;;  %v422_v52 = vadd.f32 %v421_v48, %v349_v32  ;;  %v469_v16 = vmul.f32 %v369_v36, %v369_v36 }
  0xc4   : > { %v492_v55 = vadd.f32 %v491_v51, %v461_v49 }
  0xc8   : > { %v389_v61 = vpop.f32.mrf.mxu2 }
  0xc9   : > { %v351_v35 = vpop.f32.mrf.mxu0  ;;  %v371_v50 = vpop.f32.mrf.mxu1  ;;  %v477_v49 = vmul.f32 %v389_v61, %v389_v61 }
  0xca   : > { %v462_v53 = vmul.f32 %v351_v35, %v351_v35  ;;  %v423_v56 = vadd.f32 %v422_v52, %v351_v35  ;;  %v470_v19 = vmul.f32 %v371_v50, %v371_v50 }
  0xcc   : > { %v493_v58 = vadd.f32 %v492_v55, %v462_v53 }
  0xd0   : > { %v391_v15 = vpop.f32.mrf.mxu2 }
  0xd1   : > { %v354_v46 = vpop.f32.mrf.mxu0  ;;  %v374_v4 = vpop.f32.mrf.mxu1  ;;  %v478_v53 = vmul.f32 %v391_v15, %v391_v15 }
  0xd2   : > { %v463_v57 = vmul.f32 %v354_v46, %v354_v46  ;;  %v424_v59 = vadd.f32 %v423_v56, %v354_v46  ;;  %v471_v24 = vmul.f32 %v374_v4, %v374_v4  ;;  %v476_v46 = vmul.f32 %v951_v42, %v951_v42 }
  0xd4   : > { %v494_v62 = vadd.f32 %v493_v58, %v463_v57 }
  0xd8   : > { %v394_v39 = vpop.f32.mrf.mxu2 }
  0xd9   : > { %v356_v60 = vpop.f32.mrf.mxu0  ;;  %v376_v22 = vpop.f32.mrf.mxu1  ;;  %v479_v58 = vmul.f32 %v394_v39, %v394_v39 }
  0xda   : > { %v425_v63 = vadd.f32 %v424_v59, %v356_v60  ;;  %v464_v0 = vmul.f32 %v356_v60, %v356_v60  ;;  %v472_v35 = vmul.f32 %v376_v22, %v376_v22 }
  0xdc   : > { %v426_v2 = vadd.f32 %v425_v63, %v359_v23  ;;  %v495_v3 = vadd.f32 %v494_v62, %v464_v0  ;;  %v481_v62 = vmul.f32 %v945_v33, %v945_v33 }
  0xde   : > { %v427_v6 = vadd.f32 %v426_v2, %v361_v25  ;;  %v496_v7 = vadd.f32 %v495_v3, %v465_v1  ;;  %v409_v25 = vpop.f32.mrf.mxu3  ;;  %v483_v3 = vmul.f32 %v953_v54, %v953_v54 }
  0xe0   : > { %v428_v10 = vadd.f32 %v427_v6, %v364_v28  ;;  %v497_v11 = vadd.f32 %v496_v7, %v466_v5  ;;  %v473_v28 = vmul.f32 %v941_v27, %v941_v27  ;;  %v396_v55 = vpop.f32.mrf.mxu2  ;;  %v484_v6 = vmul.f32 %v406_v8, %v406_v8 }
  0xe1   : > { %v480_v60 = vmul.f32 %v396_v55, %v396_v55 }
  0xe2   : > { %v498_v13 = vadd.f32 %v497_v11, %v467_v9  ;;  %v429_v14 = vadd.f32 %v428_v10, %v366_v31  ;;  %v485_v10 = vmul.f32 %v409_v25, %v409_v25 }
  0xe4   : > { %v430_v17 = vadd.f32 %v429_v14, %v369_v36  ;;  %v499_v18 = vadd.f32 %v498_v13, %v468_v12  ;;  %v474_v36 = vmul.f32 %v943_v30, %v943_v30 }
  0xe6   : > { %v431_v20 = vadd.f32 %v430_v17, %v371_v50  ;;  %v500_v21 = vadd.f32 %v499_v18, %v469_v16  ;;  %v411_v48 = vpop.f32.mrf.mxu3 }
  0xe7   : > { %v486_v13 = vmul.f32 %v411_v48, %v411_v48 }
  0xe8   : > { %v432_v23 = vadd.f32 %v431_v20, %v374_v4  ;;  %v501_v26 = vadd.f32 %v500_v21, %v470_v19 }
  0xea   : > { %v502_v29 = vadd.f32 %v501_v26, %v471_v24  ;;  %v433_v32 = vadd.f32 %v432_v23, %v376_v22 }
  0xec   : > { %v434_v31 = vadd.f32 %v433_v32, %v941_v27  ;;  %v503_v38 = vadd.f32 %v502_v29, %v472_v35 }
  0xee   : > { %v435_v40 = vadd.f32 %v434_v31, %v943_v30  ;;  %v504_v41 = vadd.f32 %v503_v38, %v473_v28  ;;  %v414_v0 = vpop.f32.mrf.mxu3 }
  0xef   : > { %v487_v17 = vmul.f32 %v414_v0, %v414_v0 }
  0xf0   : > { %v436_v44 = vadd.f32 %v435_v40, %v947_v34  ;;  %v505_v45 = vadd.f32 %v504_v41, %v474_v36 }
  0xf2   : > { %v506_v47 = vadd.f32 %v505_v45, %v475_v43  ;;  %v437_v27 = vadd.f32 %v436_v44, %v951_v42 }
  0xf4   : > { %v438_v50 = vadd.f32 %v437_v27, %v389_v61  ;;  %v507_v51 = vadd.f32 %v506_v47, %v476_v46  ;;  %v482_v61 = vmul.f32 %v949_v37, %v949_v37 }
  0xf6   : > { %v439_v52 = vadd.f32 %v438_v50, %v391_v15  ;;  %v508_v30 = vadd.f32 %v507_v51, %v477_v49  ;;  %v416_v15 = vpop.f32.mrf.mxu3 }
  0xf7   : > { %v488_v20 = vmul.f32 %v416_v15, %v416_v15 }
  0xf8   : > { %v509_v56 = vadd.f32 %v508_v30, %v478_v53  ;;  %v440_v57 = vadd.f32 %v439_v52, %v394_v39 }
  0xfa   : > { %v510_v59 = vadd.f32 %v509_v56, %v479_v58  ;;  %v441_v34 = vadd.f32 %v440_v57, %v396_v55 }
  0xfc   : > { %v442_v63 = vadd.f32 %v441_v34, %v945_v33  ;;  %v511_v42 = vadd.f32 %v510_v59, %v480_v60 }
  0xfe   : > { %v443_v1 = vadd.f32 %v442_v63, %v949_v37  ;;  %v512_v2 = vadd.f32 %v511_v42, %v481_v62 }
 0x100   : > { %v444_v4 = vadd.f32 %v443_v1, %v953_v54  ;;  %v513_v5 = vadd.f32 %v512_v2, %v482_v61 }
 0x102   : > { %v514_v7 = vadd.f32 %v513_v5, %v483_v3  ;;  %v445_v9 = vadd.f32 %v444_v4, %v406_v8 }
 0x104   : > { %v446_v33 = vadd.f32 %v445_v9, %v409_v25  ;;  %v515_v11 = vadd.f32 %v514_v7, %v484_v6 }
 0x106   : > { %v447_v12 = vadd.f32 %v446_v33, %v411_v48  ;;  %v516_v14 = vadd.f32 %v515_v11, %v485_v10 }
 0x108   : > { %v517_v37 = vadd.f32 %v516_v14, %v486_v13  ;;  %v448_v16 = vadd.f32 %v447_v12, %v414_v0 }
 0x10a   : > { %v518_v18 = vadd.f32 %v517_v37, %v487_v17  ;;  %v449_v19 = vadd.f32 %v448_v16, %v416_v15 }
 0x10c   : > { %v450_v54 = vrot.slane %v449_v19, 4  ;;  %v519_v21 = vadd.f32 %v518_v18, %v488_v20 }
 0x10e   : > { %v451_v22 = vadd.f32 %v450_v54, %v449_v19  ;;  %v520_v8 = vrot.slane %v519_v21, 4 }
 0x110   : > { %v452_v23 = vrot.slane %v451_v22, 2  ;;  %v521_v24 = vadd.f32 %v520_v8, %v519_v21 }
 0x112   : > { %v453_v26 = vadd.f32 %v452_v23, %v451_v22  ;;  %v522_v25 = vrot.slane %v521_v24, 2 }
 0x114   : > { %v454_v29 = vrot.slane %v453_v26, 1  ;;  %v523_v32 = vadd.f32 %v522_v25, %v521_v24 }
 0x116   : > { %v455_v35 = vadd.f32 %v454_v29, %v453_v26  ;;  %v524_v28 = vrot.slane %v523_v32, 1 }
 0x118   : > { %456 = vst [vmem:[%s137_s16] sm:$0x1] %v455_v35  ;;  %v525_v31 = vadd.f32 %v524_v28, %v523_v32 }
 0x11a   : > { %526 = vst [vmem:[%s137_s16 + $0x1] sm:$0x1] %v525_v31 }
 0x11b   : > { %794 = shalt.err (!%p791_p3)
}
 0x11c   : > { %728 = dma.vmem_to_hbm [thread:$0]  (%p884_p5), %s541_s17, 32, %s543_s21, %s528_s13  }
 0x11d PF: > { %p734_p4 = scmp.ge.s32.totalorder %s829_s12, 2  ;;  %s554_s29 = sand.u32 1, %s817_s9  }
 0x11e   : > { %s555_s30 = scalar_lea.sflag [#allocation3], %s554_s29 }
 0x11f   : > { %p731_p7 = pnand %p734_p4, %p888_p6 }
 0x121   : > { %p732_p8 = pneg %p731_p7 }
 0x123   : > { %812 = dma.done.wait (%p732_p8), %s555_s30, 32  }
 0x124   : > { %814 = vsyncadd (%p732_p8), %s555_s30, 4294967264  ;;  %p12_p9 = scmp.ge.s32.totalorder %s871_s15, 4   ;;  %s1013_s9 = smov %s821_s10 }
 0x125   : > { %s1014_s10 = smov %s825_s11  ;;  %s1015_s11 = smov %s882_s18 }
 0x126   : > { %s1016_s12 = smov %s871_s15  ;;  %14 = sbr.rel (!%p12_p9) target bundleno = 3 (0x3), region = 63 }
 0x12b   :  { %561 = vsyncpa [#allocation3], 1 }
 0x12c   :  { %563 = vsyncpa [#allocation3 + $0x1], 1 }

</bundles_post_ra>
